<compile_context>
chip_gen: v7x
topology: tpu7x:2x2x1
jax: 0.10.0
libtpu: 0.0.40
codegen_flags: <defaults>
</compile_context>

<pallas_src>
import functools

import jax
import jax.numpy as jnp
from jax.experimental import pallas as pl
from jax.experimental.pallas import tpu as pltpu

INPUT_DIM = 5
HIDDEN_DIM = 64


def lstm_kernel(x_ref, wpre_ref, bpre_ref, whh_ref, wfc_ref, bfc_ref,
                y_ref, *, T, B):
    """Full forward pass in one invocation.

    x_ref    : (T*B, D)   raw features, seq-major rows
    wpre_ref : (D, 4H)    fused transfer+input-hidden weight (g cols pre-scaled x2)
    bpre_ref : (1, 4H)    fused bias (g cols pre-scaled x2)
    whh_ref  : (H, 4H)    fused recurrent weight, gate cols i|f|g|o (g cols x2)
    wfc_ref  : (H, H)     fc weight (transposed)
    bfc_ref  : (1, H)     fc bias
    y_ref    : (T*B, H)   output (fc applied), stored once at the end
    """
    H = HIDDEN_DIM
    f32 = jnp.float32

    # ---- pre-pass: single batched matmul over all T*B rows ----
    proj = (jnp.dot(x_ref[...], wpre_ref[...], preferred_element_type=f32)
            + bpre_ref[...])                                   # (T*B, 4H)

    whh_all = whh_ref[...]                                     # (H, 4H)

    h = jnp.zeros((B, H), f32)
    c = jnp.zeros((B, H), f32)
    hs = []

    # ---- recurrence: one fused 256-wide matmul + one 256-wide sigmoid per step ----
    for t in range(T):  # T is a small static Python int -> full unroll
        r0 = t * B
        z = proj[r0:r0 + B, :] + jnp.dot(h, whh_all, preferred_element_type=f32)
        s = jax.nn.sigmoid(z)                                  # all 4 gates at once
        gi = s[:, 0 * H:1 * H]
        gf = s[:, 1 * H:2 * H]
        gg = 2.0 * s[:, 2 * H:3 * H] - 1.0                     # tanh(x) = 2*sigmoid(2x) - 1
        go = s[:, 3 * H:4 * H]
        c = gf * c + gi * gg
        h = go * jnp.tanh(c)
        hs.append(h)

    # ---- post-pass: fc over the whole sequence at once, single output store ----
    h_all = jnp.concatenate(hs, axis=0)                        # (T*B, H), stays in vregs
    y_ref[...] = (jnp.dot(h_all, wfc_ref[...], preferred_element_type=f32)
                  + bfc_ref[...]).astype(y_ref.dtype)


@jax.jit
def lstm_forward(features, params):
    """features: (T, B, INPUT_DIM) float32 -> y: (T, B, H) (squeeze(0) if T == 1)."""
    T, B, D = features.shape
    H = HIDDEN_DIM
    f32 = jnp.float32

    x2d = features.reshape(T * B, D)                           # seq-major row layout

    wt = params["w_transfer"].T.astype(f32)                    # (D, H)
    bt = params["b_transfer"][None, :].astype(f32)             # (1, H)
    wih = params["w_ih"].T.astype(f32)                         # (H, 4H), gate order i,f,g,o
    bg = (params["b_ih"] + params["b_hh"])[None, :].astype(f32)  # (1, 4H)

    # Fold transfer Linear into W_ih:  (x@wt+bt)@wih + bg == x@(wt@wih) + (bt@wih + bg)
    w_pre = wt @ wih                                           # (D, 4H)
    b_pre = bt @ wih + bg                                      # (1, 4H)

    whh_all = params["w_hh"].T.astype(f32)                     # (H, 4H), gate cols i|f|g|o

    # Fold the x2 of tanh(x)=2*sigmoid(2x)-1 into the g-gate columns.
    gate_scale = jnp.ones((4 * H,), f32).at[2 * H:3 * H].set(2.0)[None, :]
    w_pre = w_pre * gate_scale
    b_pre = b_pre * gate_scale
    whh_all = whh_all * gate_scale

    wfc = params["w_fc"].T.astype(f32)                         # (H, H)
    bfc = params["b_fc"][None, :].astype(f32)                  # (1, H)

    vmem_spec = lambda: pl.BlockSpec(memory_space=pltpu.MemorySpace.VMEM)
    y2d = pl.pallas_call(
        functools.partial(lstm_kernel, T=T, B=B),
        out_shape=jax.ShapeDtypeStruct((T * B, H), jnp.float32),
        in_specs=[vmem_spec() for _ in range(6)],
        out_specs=vmem_spec(),
    )(x2d, w_pre, b_pre, whh_all, wfc, bfc)

    y = y2d.reshape(T, B, H)
    # torch .squeeze(0): only drops leading dim if it is size 1
    if y.shape[0] == 1:
        y = jnp.squeeze(y, axis=0)
    return y


def init_params(key):
    """Deterministic synthetic parameters with PyTorch-like shapes."""
    H, D = HIDDEN_DIM, INPUT_DIM
    ks = jax.random.split(key, 8)
    u = lambda k, shape, bound: jax.random.uniform(k, shape, jnp.float32, -bound, bound)
    return {
        "w_transfer": u(ks[0], (H, D), 1.0 / (D ** 0.5)),
        "b_transfer": u(ks[1], (H,), 1.0 / (D ** 0.5)),
        "w_ih": u(ks[2], (4 * H, H), 1.0 / (H ** 0.5)),
        "w_hh": u(ks[3], (4 * H, H), 1.0 / (H ** 0.5)),
        "b_ih": u(ks[4], (4 * H,), 1.0 / (H ** 0.5)),
        "b_hh": u(ks[5], (4 * H,), 1.0 / (H ** 0.5)),
        "w_fc": u(ks[6], (H, H), 1.0 / (H ** 0.5)),
        "b_fc": u(ks[7], (H,), 1.0 / (H ** 0.5)),
    }


def lstm_reference(features, params):
    """Pure-JAX reference (lax.scan) mirroring the PyTorch forward exactly (unfused)."""
    H = HIDDEN_DIM
    xt = features @ params["w_transfer"].T + params["b_transfer"]  # (T, B, H)
    wih, whh = params["w_ih"], params["w_hh"]
    b = params["b_ih"] + params["b_hh"]

    def step(carry, x):
        h, c = carry
        g = x @ wih.T + h @ whh.T + b
        i = jax.nn.sigmoid(g[:, :H])
        f = jax.nn.sigmoid(g[:, H:2 * H])
        gg = jnp.tanh(g[:, 2 * H:3 * H])
        o = jax.nn.sigmoid(g[:, 3 * H:])
        c = f * c + i * gg
        h = o * jnp.tanh(c)
        return (h, c), h

    B = features.shape[1]
    h0 = jnp.zeros((B, H), jnp.float32)
    c0 = jnp.zeros((B, H), jnp.float32)
    _, hs = jax.lax.scan(step, (h0, c0), xt)
    y = hs @ params["w_fc"].T + params["b_fc"]
    if y.shape[0] == 1:
        y = jnp.squeeze(y, axis=0)
    return y


if __name__ == "__main__":
    key = jax.random.PRNGKey(0)
    kp, kx = jax.random.split(key)
    params = init_params(kp)

    # seq=8, batch=2, feature dim fixed at 5 by the module
    T, B = 8, 2
    features = jax.random.normal(kx, (T, B, INPUT_DIM), jnp.float32)

    y = jax.block_until_ready(lstm_forward(features, params))
    y_ref = lstm_reference(features, params)
    assert y.shape == y_ref.shape, (y.shape, y_ref.shape)
    # Tolerance slightly looser than 1e-5: the transfer-Linear fold and the
    # packed-sigmoid tanh identity re-associate f32 math (exact in real arith).
    assert jnp.allclose(y, y_ref, atol=1e-4, rtol=1e-4), float(jnp.max(jnp.abs(y - y_ref)))

    # Also exercise the squeeze(0) path the PyTorch module uses with (1, 1, 5).
    f1 = jax.random.normal(jax.random.PRNGKey(1), (1, 1, INPUT_DIM), jnp.float32)
    y1 = jax.block_until_ready(lstm_forward(f1, params))
    y1_ref = lstm_reference(f1, params)
    assert y1.shape == y1_ref.shape == (1, HIDDEN_DIM), (y1.shape, y1_ref.shape)
    assert jnp.allclose(y1, y1_ref, atol=1e-4, rtol=1e-4), float(jnp.max(jnp.abs(y1 - y1_ref)))

    # TODO(synk): predict_delay() host-side timing from the constructor is not part of
    # the forward pass and is intentionally not reproduced.
    print("KERNEL_OK")
</pallas_src>

<mosaic_0001>
module attributes {stable_mosaic.version = 11 : i64} {
  func.func @lstm_kernel(%arg0: memref<16x5xf32, #tpu.memory_space<vmem>>, %arg1: memref<5x256xf32, #tpu.memory_space<vmem>>, %arg2: memref<1x256xf32, #tpu.memory_space<vmem>>, %arg3: memref<64x256xf32, #tpu.memory_space<vmem>>, %arg4: memref<64x64xf32, #tpu.memory_space<vmem>>, %arg5: memref<1x64xf32, #tpu.memory_space<vmem>>, %arg6: memref<16x64xf32, #tpu.memory_space<vmem>>) attributes {dimension_semantics = [], scalar_prefetch = 0 : i64, scratch_operands = 0 : i64, tpu.core_type = #tpu.core_type<tc>} {
    %c0 = arith.constant 0 : index
    %c0_0 = arith.constant 0 : index
    %0 = vector.load %arg0[%c0, %c0_0] : memref<16x5xf32, #tpu.memory_space<vmem>>, vector<16x5xf32>
    %c0_1 = arith.constant 0 : index
    %c0_2 = arith.constant 0 : index
    %1 = vector.load %arg1[%c0_1, %c0_2] : memref<5x256xf32, #tpu.memory_space<vmem>>, vector<5x256xf32>
    %cst = arith.constant dense<0.000000e+00> : vector<16x256xf32>
    %2 = tpu.matmul %0, %1, %cst {dimension_numbers = #tpu.dot_dimension_numbers<[1], [0], [0], [1], [0, 0, 1, 1], [], []>} : vector<16x5xf32>, vector<5x256xf32>, vector<16x256xf32> -> vector<16x256xf32>
    %c0_3 = arith.constant 0 : index
    %c0_4 = arith.constant 0 : index
    %3 = vector.load %arg2[%c0_3, %c0_4] : memref<1x256xf32, #tpu.memory_space<vmem>>, vector<1x256xf32>
    %4 = vector.broadcast %3 : vector<1x256xf32> to vector<16x256xf32>
    %5 = arith.addf %2, %4 : vector<16x256xf32>
    %c0_5 = arith.constant 0 : index
    %c0_6 = arith.constant 0 : index
    %6 = vector.load %arg3[%c0_5, %c0_6] : memref<64x256xf32, #tpu.memory_space<vmem>>, vector<64x256xf32>
    %cst_7 = arith.constant 0.000000e+00 : f32
    %7 = vector.broadcast %cst_7 : f32 to vector<2x64xf32>
    %cst_8 = arith.constant 0.000000e+00 : f32
    %8 = vector.broadcast %cst_8 : f32 to vector<2x64xf32>
    %9 = vector.extract_strided_slice %5 {offsets = [0, 0], sizes = [2, 256], strides = [1, 1]} : vector<16x256xf32> to vector<2x256xf32>
    %cst_9 = arith.constant dense<0.000000e+00> : vector<2x256xf32>
    %10 = tpu.matmul %7, %6, %cst_9 {dimension_numbers = #tpu.dot_dimension_numbers<[1], [0], [0], [1], [0, 0, 1, 1], [], []>} : vector<2x64xf32>, vector<64x256xf32>, vector<2x256xf32> -> vector<2x256xf32>
    %11 = arith.addf %9, %10 : vector<2x256xf32>
    %12 = arith.negf %11 : vector<2x256xf32>
    %13 = math.exp %12 : vector<2x256xf32>
    %cst_10 = arith.constant 1.000000e+00 : f32
    %14 = vector.broadcast %cst_10 : f32 to vector<2x256xf32>
    %15 = arith.addf %14, %13 : vector<2x256xf32>
    %16 = arith.divf %14, %15 : vector<2x256xf32>
    %17 = vector.extract_strided_slice %16 {offsets = [0, 0], sizes = [2, 64], strides = [1, 1]} : vector<2x256xf32> to vector<2x64xf32>
    %18 = vector.extract_strided_slice %16 {offsets = [0, 64], sizes = [2, 64], strides = [1, 1]} : vector<2x256xf32> to vector<2x64xf32>
    %19 = vector.extract_strided_slice %16 {offsets = [0, 128], sizes = [2, 64], strides = [1, 1]} : vector<2x256xf32> to vector<2x64xf32>
    %cst_11 = arith.constant 2.000000e+00 : f32
    %20 = vector.broadcast %cst_11 : f32 to vector<2x64xf32>
    %21 = arith.mulf %20, %19 : vector<2x64xf32>
    %cst_12 = arith.constant 1.000000e+00 : f32
    %22 = vector.broadcast %cst_12 : f32 to vector<2x64xf32>
    %23 = arith.subf %21, %22 : vector<2x64xf32>
    %24 = vector.extract_strided_slice %16 {offsets = [0, 192], sizes = [2, 64], strides = [1, 1]} : vector<2x256xf32> to vector<2x64xf32>
    %25 = arith.mulf %18, %8 : vector<2x64xf32>
    %26 = arith.mulf %17, %23 : vector<2x64xf32>
    %27 = arith.addf %25, %26 : vector<2x64xf32>
    %28 = math.tanh %27 : vector<2x64xf32>
    %29 = arith.mulf %24, %28 : vector<2x64xf32>
    %30 = vector.extract_strided_slice %5 {offsets = [2, 0], sizes = [2, 256], strides = [1, 1]} : vector<16x256xf32> to vector<2x256xf32>
    %cst_13 = arith.constant dense<0.000000e+00> : vector<2x256xf32>
    %31 = tpu.matmul %29, %6, %cst_13 {dimension_numbers = #tpu.dot_dimension_numbers<[1], [0], [0], [1], [0, 0, 1, 1], [], []>} : vector<2x64xf32>, vector<64x256xf32>, vector<2x256xf32> -> vector<2x256xf32>
    %32 = arith.addf %30, %31 : vector<2x256xf32>
    %33 = arith.negf %32 : vector<2x256xf32>
    %34 = math.exp %33 : vector<2x256xf32>
    %cst_14 = arith.constant 1.000000e+00 : f32
    %35 = vector.broadcast %cst_14 : f32 to vector<2x256xf32>
    %36 = arith.addf %35, %34 : vector<2x256xf32>
    %37 = arith.divf %35, %36 : vector<2x256xf32>
    %38 = vector.extract_strided_slice %37 {offsets = [0, 0], sizes = [2, 64], strides = [1, 1]} : vector<2x256xf32> to vector<2x64xf32>
    %39 = vector.extract_strided_slice %37 {offsets = [0, 64], sizes = [2, 64], strides = [1, 1]} : vector<2x256xf32> to vector<2x64xf32>
    %40 = vector.extract_strided_slice %37 {offsets = [0, 128], sizes = [2, 64], strides = [1, 1]} : vector<2x256xf32> to vector<2x64xf32>
    %cst_15 = arith.constant 2.000000e+00 : f32
    %41 = vector.broadcast %cst_15 : f32 to vector<2x64xf32>
    %42 = arith.mulf %41, %40 : vector<2x64xf32>
    %cst_16 = arith.constant 1.000000e+00 : f32
    %43 = vector.broadcast %cst_16 : f32 to vector<2x64xf32>
    %44 = arith.subf %42, %43 : vector<2x64xf32>
    %45 = vector.extract_strided_slice %37 {offsets = [0, 192], sizes = [2, 64], strides = [1, 1]} : vector<2x256xf32> to vector<2x64xf32>
    %46 = arith.mulf %39, %27 : vector<2x64xf32>
    %47 = arith.mulf %38, %44 : vector<2x64xf32>
    %48 = arith.addf %46, %47 : vector<2x64xf32>
    %49 = math.tanh %48 : vector<2x64xf32>
    %50 = arith.mulf %45, %49 : vector<2x64xf32>
    %51 = vector.extract_strided_slice %5 {offsets = [4, 0], sizes = [2, 256], strides = [1, 1]} : vector<16x256xf32> to vector<2x256xf32>
    %cst_17 = arith.constant dense<0.000000e+00> : vector<2x256xf32>
    %52 = tpu.matmul %50, %6, %cst_17 {dimension_numbers = #tpu.dot_dimension_numbers<[1], [0], [0], [1], [0, 0, 1, 1], [], []>} : vector<2x64xf32>, vector<64x256xf32>, vector<2x256xf32> -> vector<2x256xf32>
    %53 = arith.addf %51, %52 : vector<2x256xf32>
    %54 = arith.negf %53 : vector<2x256xf32>
    %55 = math.exp %54 : vector<2x256xf32>
    %cst_18 = arith.constant 1.000000e+00 : f32
    %56 = vector.broadcast %cst_18 : f32 to vector<2x256xf32>
    %57 = arith.addf %56, %55 : vector<2x256xf32>
    %58 = arith.divf %56, %57 : vector<2x256xf32>
    %59 = vector.extract_strided_slice %58 {offsets = [0, 0], sizes = [2, 64], strides = [1, 1]} : vector<2x256xf32> to vector<2x64xf32>
    %60 = vector.extract_strided_slice %58 {offsets = [0, 64], sizes = [2, 64], strides = [1, 1]} : vector<2x256xf32> to vector<2x64xf32>
    %61 = vector.extract_strided_slice %58 {offsets = [0, 128], sizes = [2, 64], strides = [1, 1]} : vector<2x256xf32> to vector<2x64xf32>
    %cst_19 = arith.constant 2.000000e+00 : f32
    %62 = vector.broadcast %cst_19 : f32 to vector<2x64xf32>
    %63 = arith.mulf %62, %61 : vector<2x64xf32>
    %cst_20 = arith.constant 1.000000e+00 : f32
    %64 = vector.broadcast %cst_20 : f32 to vector<2x64xf32>
    %65 = arith.subf %63, %64 : vector<2x64xf32>
    %66 = vector.extract_strided_slice %58 {offsets = [0, 192], sizes = [2, 64], strides = [1, 1]} : vector<2x256xf32> to vector<2x64xf32>
    %67 = arith.mulf %60, %48 : vector<2x64xf32>
    %68 = arith.mulf %59, %65 : vector<2x64xf32>
    %69 = arith.addf %67, %68 : vector<2x64xf32>
    %70 = math.tanh %69 : vector<2x64xf32>
    %71 = arith.mulf %66, %70 : vector<2x64xf32>
    %72 = vector.extract_strided_slice %5 {offsets = [6, 0], sizes = [2, 256], strides = [1, 1]} : vector<16x256xf32> to vector<2x256xf32>
    %cst_21 = arith.constant dense<0.000000e+00> : vector<2x256xf32>
    %73 = tpu.matmul %71, %6, %cst_21 {dimension_numbers = #tpu.dot_dimension_numbers<[1], [0], [0], [1], [0, 0, 1, 1], [], []>} : vector<2x64xf32>, vector<64x256xf32>, vector<2x256xf32> -> vector<2x256xf32>
    %74 = arith.addf %72, %73 : vector<2x256xf32>
    %75 = arith.negf %74 : vector<2x256xf32>
    %76 = math.exp %75 : vector<2x256xf32>
    %cst_22 = arith.constant 1.000000e+00 : f32
    %77 = vector.broadcast %cst_22 : f32 to vector<2x256xf32>
    %78 = arith.addf %77, %76 : vector<2x256xf32>
    %79 = arith.divf %77, %78 : vector<2x256xf32>
    %80 = vector.extract_strided_slice %79 {offsets = [0, 0], sizes = [2, 64], strides = [1, 1]} : vector<2x256xf32> to vector<2x64xf32>
    %81 = vector.extract_strided_slice %79 {offsets = [0, 64], sizes = [2, 64], strides = [1, 1]} : vector<2x256xf32> to vector<2x64xf32>
    %82 = vector.extract_strided_slice %79 {offsets = [0, 128], sizes = [2, 64], strides = [1, 1]} : vector<2x256xf32> to vector<2x64xf32>
    %cst_23 = arith.constant 2.000000e+00 : f32
    %83 = vector.broadcast %cst_23 : f32 to vector<2x64xf32>
    %84 = arith.mulf %83, %82 : vector<2x64xf32>
    %cst_24 = arith.constant 1.000000e+00 : f32
    %85 = vector.broadcast %cst_24 : f32 to vector<2x64xf32>
    %86 = arith.subf %84, %85 : vector<2x64xf32>
    %87 = vector.extract_strided_slice %79 {offsets = [0, 192], sizes = [2, 64], strides = [1, 1]} : vector<2x256xf32> to vector<2x64xf32>
    %88 = arith.mulf %81, %69 : vector<2x64xf32>
    %89 = arith.mulf %80, %86 : vector<2x64xf32>
    %90 = arith.addf %88, %89 : vector<2x64xf32>
    %91 = math.tanh %90 : vector<2x64xf32>
    %92 = arith.mulf %87, %91 : vector<2x64xf32>
    %93 = vector.extract_strided_slice %5 {offsets = [8, 0], sizes = [2, 256], strides = [1, 1]} : vector<16x256xf32> to vector<2x256xf32>
    %cst_25 = arith.constant dense<0.000000e+00> : vector<2x256xf32>
    %94 = tpu.matmul %92, %6, %cst_25 {dimension_numbers = #tpu.dot_dimension_numbers<[1], [0], [0], [1], [0, 0, 1, 1], [], []>} : vector<2x64xf32>, vector<64x256xf32>, vector<2x256xf32> -> vector<2x256xf32>
    %95 = arith.addf %93, %94 : vector<2x256xf32>
    %96 = arith.negf %95 : vector<2x256xf32>
    %97 = math.exp %96 : vector<2x256xf32>
    %cst_26 = arith.constant 1.000000e+00 : f32
    %98 = vector.broadcast %cst_26 : f32 to vector<2x256xf32>
    %99 = arith.addf %98, %97 : vector<2x256xf32>
    %100 = arith.divf %98, %99 : vector<2x256xf32>
    %101 = vector.extract_strided_slice %100 {offsets = [0, 0], sizes = [2, 64], strides = [1, 1]} : vector<2x256xf32> to vector<2x64xf32>
    %102 = vector.extract_strided_slice %100 {offsets = [0, 64], sizes = [2, 64], strides = [1, 1]} : vector<2x256xf32> to vector<2x64xf32>
    %103 = vector.extract_strided_slice %100 {offsets = [0, 128], sizes = [2, 64], strides = [1, 1]} : vector<2x256xf32> to vector<2x64xf32>
    %cst_27 = arith.constant 2.000000e+00 : f32
    %104 = vector.broadcast %cst_27 : f32 to vector<2x64xf32>
    %105 = arith.mulf %104, %103 : vector<2x64xf32>
    %cst_28 = arith.constant 1.000000e+00 : f32
    %106 = vector.broadcast %cst_28 : f32 to vector<2x64xf32>
    %107 = arith.subf %105, %106 : vector<2x64xf32>
    %108 = vector.extract_strided_slice %100 {offsets = [0, 192], sizes = [2, 64], strides = [1, 1]} : vector<2x256xf32> to vector<2x64xf32>
    %109 = arith.mulf %102, %90 : vector<2x64xf32>
    %110 = arith.mulf %101, %107 : vector<2x64xf32>
    %111 = arith.addf %109, %110 : vector<2x64xf32>
    %112 = math.tanh %111 : vector<2x64xf32>
    %113 = arith.mulf %108, %112 : vector<2x64xf32>
    %114 = vector.extract_strided_slice %5 {offsets = [10, 0], sizes = [2, 256], strides = [1, 1]} : vector<16x256xf32> to vector<2x256xf32>
    %cst_29 = arith.constant dense<0.000000e+00> : vector<2x256xf32>
    %115 = tpu.matmul %113, %6, %cst_29 {dimension_numbers = #tpu.dot_dimension_numbers<[1], [0], [0], [1], [0, 0, 1, 1], [], []>} : vector<2x64xf32>, vector<64x256xf32>, vector<2x256xf32> -> vector<2x256xf32>
    %116 = arith.addf %114, %115 : vector<2x256xf32>
    %117 = arith.negf %116 : vector<2x256xf32>
    %118 = math.exp %117 : vector<2x256xf32>
    %cst_30 = arith.constant 1.000000e+00 : f32
    %119 = vector.broadcast %cst_30 : f32 to vector<2x256xf32>
    %120 = arith.addf %119, %118 : vector<2x256xf32>
    %121 = arith.divf %119, %120 : vector<2x256xf32>
    %122 = vector.extract_strided_slice %121 {offsets = [0, 0], sizes = [2, 64], strides = [1, 1]} : vector<2x256xf32> to vector<2x64xf32>
    %123 = vector.extract_strided_slice %121 {offsets = [0, 64], sizes = [2, 64], strides = [1, 1]} : vector<2x256xf32> to vector<2x64xf32>
    %124 = vector.extract_strided_slice %121 {offsets = [0, 128], sizes = [2, 64], strides = [1, 1]} : vector<2x256xf32> to vector<2x64xf32>
    %cst_31 = arith.constant 2.000000e+00 : f32
    %125 = vector.broadcast %cst_31 : f32 to vector<2x64xf32>
    %126 = arith.mulf %125, %124 : vector<2x64xf32>
    %cst_32 = arith.constant 1.000000e+00 : f32
    %127 = vector.broadcast %cst_32 : f32 to vector<2x64xf32>
    %128 = arith.subf %126, %127 : vector<2x64xf32>
    %129 = vector.extract_strided_slice %121 {offsets = [0, 192], sizes = [2, 64], strides = [1, 1]} : vector<2x256xf32> to vector<2x64xf32>
    %130 = arith.mulf %123, %111 : vector<2x64xf32>
    %131 = arith.mulf %122, %128 : vector<2x64xf32>
    %132 = arith.addf %130, %131 : vector<2x64xf32>
    %133 = math.tanh %132 : vector<2x64xf32>
    %134 = arith.mulf %129, %133 : vector<2x64xf32>
    %135 = vector.extract_strided_slice %5 {offsets = [12, 0], sizes = [2, 256], strides = [1, 1]} : vector<16x256xf32> to vector<2x256xf32>
    %cst_33 = arith.constant dense<0.000000e+00> : vector<2x256xf32>
    %136 = tpu.matmul %134, %6, %cst_33 {dimension_numbers = #tpu.dot_dimension_numbers<[1], [0], [0], [1], [0, 0, 1, 1], [], []>} : vector<2x64xf32>, vector<64x256xf32>, vector<2x256xf32> -> vector<2x256xf32>
    %137 = arith.addf %135, %136 : vector<2x256xf32>
    %138 = arith.negf %137 : vector<2x256xf32>
    %139 = math.exp %138 : vector<2x256xf32>
    %cst_34 = arith.constant 1.000000e+00 : f32
    %140 = vector.broadcast %cst_34 : f32 to vector<2x256xf32>
    %141 = arith.addf %140, %139 : vector<2x256xf32>
    %142 = arith.divf %140, %141 : vector<2x256xf32>
    %143 = vector.extract_strided_slice %142 {offsets = [0, 0], sizes = [2, 64], strides = [1, 1]} : vector<2x256xf32> to vector<2x64xf32>
    %144 = vector.extract_strided_slice %142 {offsets = [0, 64], sizes = [2, 64], strides = [1, 1]} : vector<2x256xf32> to vector<2x64xf32>
    %145 = vector.extract_strided_slice %142 {offsets = [0, 128], sizes = [2, 64], strides = [1, 1]} : vector<2x256xf32> to vector<2x64xf32>
    %cst_35 = arith.constant 2.000000e+00 : f32
    %146 = vector.broadcast %cst_35 : f32 to vector<2x64xf32>
    %147 = arith.mulf %146, %145 : vector<2x64xf32>
    %cst_36 = arith.constant 1.000000e+00 : f32
    %148 = vector.broadcast %cst_36 : f32 to vector<2x64xf32>
    %149 = arith.subf %147, %148 : vector<2x64xf32>
    %150 = vector.extract_strided_slice %142 {offsets = [0, 192], sizes = [2, 64], strides = [1, 1]} : vector<2x256xf32> to vector<2x64xf32>
    %151 = arith.mulf %144, %132 : vector<2x64xf32>
    %152 = arith.mulf %143, %149 : vector<2x64xf32>
    %153 = arith.addf %151, %152 : vector<2x64xf32>
    %154 = math.tanh %153 : vector<2x64xf32>
    %155 = arith.mulf %150, %154 : vector<2x64xf32>
    %156 = vector.extract_strided_slice %5 {offsets = [14, 0], sizes = [2, 256], strides = [1, 1]} : vector<16x256xf32> to vector<2x256xf32>
    %cst_37 = arith.constant dense<0.000000e+00> : vector<2x256xf32>
    %157 = tpu.matmul %155, %6, %cst_37 {dimension_numbers = #tpu.dot_dimension_numbers<[1], [0], [0], [1], [0, 0, 1, 1], [], []>} : vector<2x64xf32>, vector<64x256xf32>, vector<2x256xf32> -> vector<2x256xf32>
    %158 = arith.addf %156, %157 : vector<2x256xf32>
    %159 = arith.negf %158 : vector<2x256xf32>
    %160 = math.exp %159 : vector<2x256xf32>
    %cst_38 = arith.constant 1.000000e+00 : f32
    %161 = vector.broadcast %cst_38 : f32 to vector<2x256xf32>
    %162 = arith.addf %161, %160 : vector<2x256xf32>
    %163 = arith.divf %161, %162 : vector<2x256xf32>
    %164 = vector.extract_strided_slice %163 {offsets = [0, 0], sizes = [2, 64], strides = [1, 1]} : vector<2x256xf32> to vector<2x64xf32>
    %165 = vector.extract_strided_slice %163 {offsets = [0, 64], sizes = [2, 64], strides = [1, 1]} : vector<2x256xf32> to vector<2x64xf32>
    %166 = vector.extract_strided_slice %163 {offsets = [0, 128], sizes = [2, 64], strides = [1, 1]} : vector<2x256xf32> to vector<2x64xf32>
    %cst_39 = arith.constant 2.000000e+00 : f32
    %167 = vector.broadcast %cst_39 : f32 to vector<2x64xf32>
    %168 = arith.mulf %167, %166 : vector<2x64xf32>
    %cst_40 = arith.constant 1.000000e+00 : f32
    %169 = vector.broadcast %cst_40 : f32 to vector<2x64xf32>
    %170 = arith.subf %168, %169 : vector<2x64xf32>
    %171 = vector.extract_strided_slice %163 {offsets = [0, 192], sizes = [2, 64], strides = [1, 1]} : vector<2x256xf32> to vector<2x64xf32>
    %172 = arith.mulf %165, %153 : vector<2x64xf32>
    %173 = arith.mulf %164, %170 : vector<2x64xf32>
    %174 = arith.addf %172, %173 : vector<2x64xf32>
    %175 = math.tanh %174 : vector<2x64xf32>
    %176 = arith.mulf %171, %175 : vector<2x64xf32>
    %177 = tpu.concatenate %29, %50, %71, %92, %113, %134, %155, %176 in 0 : vector<2x64xf32>, vector<2x64xf32>, vector<2x64xf32>, vector<2x64xf32>, vector<2x64xf32>, vector<2x64xf32>, vector<2x64xf32>, vector<2x64xf32> -> vector<16x64xf32>
    %c0_41 = arith.constant 0 : index
    %c0_42 = arith.constant 0 : index
    %178 = vector.load %arg4[%c0_41, %c0_42] : memref<64x64xf32, #tpu.memory_space<vmem>>, vector<64x64xf32>
    %cst_43 = arith.constant dense<0.000000e+00> : vector<16x64xf32>
    %179 = tpu.matmul %177, %178, %cst_43 {dimension_numbers = #tpu.dot_dimension_numbers<[1], [0], [0], [1], [0, 0, 1, 1], [], []>} : vector<16x64xf32>, vector<64x64xf32>, vector<16x64xf32> -> vector<16x64xf32>
    %c0_44 = arith.constant 0 : index
    %c0_45 = arith.constant 0 : index
    %180 = vector.load %arg5[%c0_44, %c0_45] : memref<1x64xf32, #tpu.memory_space<vmem>>, vector<1x64xf32>
    %181 = vector.broadcast %180 : vector<1x64xf32> to vector<16x64xf32>
    %182 = arith.addf %179, %181 : vector<16x64xf32>
    %c0_46 = arith.constant 0 : index
    %c0_47 = arith.constant 0 : index
    %183 = vector.load %arg6[%c0_46, %c0_47] : memref<16x64xf32, #tpu.memory_space<vmem>>, vector<16x64xf32>
    tpu.vector_store %arg6[%c0_46, %c0_47], %182 {strides = array<i32>} : memref<16x64xf32, #tpu.memory_space<vmem>>, vector<16x64xf32>,
    return
  }
}

</mosaic_0001>

<bundles_post_ra>
// kernel: lstm_forward.1
= control target key start
LH: loop header
LB: loop body
LE: loop exit
PB: predicated region body
PF: predicated region fallthrough
CT: control target
= control target key end

     0   :  { %v1463_v7 = vmov 0.0   ;;  %vm47_vm0 = vcmask 1044480   ;;  %vm40_vm1 = vcmask 39936   ;;  %s1781_s0 = inlined_call_operand.vmem [shape: f32[16,5], index: 0, kind: input, shape index: {}]   ;;  %s1782_s1 = inlined_call_operand.vmem [shape: f32[5,256], index: 1, kind: input, shape index: {}]   ;;  %s1783_s2 = inlined_call_operand.vmem [shape: f32[1,256], index: 2, kind: input, shape index: {}]   ;;  %s1784_s3 = inlined_call_operand.vmem [shape: f32[64,256], index: 3, kind: input, shape index: {}]   ;;  %s1785_s4 = inlined_call_operand.vmem [shape: f32[64,64], index: 4, kind: input, shape index: {}]   ;;  %s1786_s5 = inlined_call_operand.vmem [shape: f32[1,64], index: 5, kind: input, shape index: {}]   ;;  %s1787_s6 = inlined_call_operand.hbm [shape: f32[16,64], index: 6, kind: output, shape index: {}]  }
   0x1   :  { %v132_v0 = vld [vmem:[%s1784_s3 + $0x8] sm:$0xff]  ;;  %v134_v1 = vld [vmem:[%s1784_s3 + $0x18] sm:$0xff]  ;;  %v131_v2 = vld [vmem:[%s1784_s3] sm:$0xff]  ;;  %118 = vmatprep.mubr.f32.mxu0 %v1463_v7  ;;  %215 = vmatprep.mubr.f32.mxu1 %v1463_v7 }
   0x2   :  { %v1512_v3 = vpack.c.bf16 %v134_v1, %v132_v0  ;;  %v133_v4 = vld [vmem:[%s1784_s3 + $0x10] sm:$0xff]  ;;  %v136_v5 = vld [vmem:[%s1784_s3 + $0x28] sm:$0xff]  ;;  %v138_v6 = vld [vmem:[%s1784_s3 + $0x38] sm:$0xff] }
   0x3   :  { %v1525_v8 = vpack.c.bf16 %v133_v4, %v131_v2  ;;  %v1527_v9 = vpack.c.bf16 %v138_v6, %v136_v5  ;;  %v135_v10 = vld [vmem:[%s1784_s3 + $0x20] sm:$0xff]  ;;  %v137_v11 = vld [vmem:[%s1784_s3 + $0x30] sm:$0xff]  ;;  %v140_v12 = vld [vmem:[%s1784_s3 + $0x48] sm:$0xff] }
   0x4   :  { %1211 = vmatprep.subr.bf16.mxu1 %v1512_v3  ;;  %v142_v13 = vld [vmem:[%s1784_s3 + $0x58] sm:$0xff]  ;;  %v1543_v14 = vpack.c.bf16 %v137_v11, %v135_v10  ;;  %v27_v15 = vld [vmem:[%s1782_s1 + $0x8] sm:$0x1f]  ;;  %v26_v16 = vld [vmem:[%s1782_s1] sm:$0x1f] }
   0x5   :  { %1213 = vmatpush1.bf16.msra.mxu1 %v1525_v8  ;;  %v1552_v17 = vpack.c.bf16 %v142_v13, %v140_v12  ;;  %v139_v18 = vld [vmem:[%s1784_s3 + $0x40] sm:$0xff]  ;;  %v141_v19 = vld [vmem:[%s1784_s3 + $0x50] sm:$0xff]  ;;  %1143 = vmatprep.subr.msk.mxu0 %vm47_vm0, %v27_v15  ;;  %v144_v21 = vld [vmem:[%s1784_s3 + $0x68] sm:$0xff] }
   0x6   :  { %1215 = vmatprep.subr.bf16.mxu1 %v1527_v9  ;;  %v24_v20 = vld [vmem:[%s1781_s0] sm:$0xff]  ;;  %1144 = vmatpush1.msk.msra.mxu0 %vm47_vm0, %v26_v16  ;;  %v146_v22 = vld [vmem:[%s1784_s3 + $0x78] sm:$0xff] }
   0x7   :  { %11 = vsyncpa [#allocation3], 0  ;;  %1145 = vmatmul.mubr.msk.f32.vlgmr.msra.gmra.mrb[0].mxu0 %vm40_vm1, %v24_v20  ;;  %1227 = vmatprep.subr.bf16.mxu0 %v1512_v3  ;;  %v1572_v23 = vpack.c.bf16 %v141_v19, %v139_v18  ;;  %v1576_v24 = vpack.c.bf16 %v146_v22, %v144_v21  ;;  %v143_v25 = vld [vmem:[%s1784_s3 + $0x60] sm:$0xff]  ;;  %v145_v26 = vld [vmem:[%s1784_s3 + $0x70] sm:$0xff]  ;;  %v30_v28 = vlaneseq  ;;  %vm147_vm2 = vcmask 523264   ;;  %s1465_s28 = smov [#allocation2]  }
   0x8   :  { %1229 = vmatpush1.bf16.msra.mxu0 %v1525_v8  ;;  %124 = vmatprep.mubr.f32.mxu0 %v1463_v7  ;;  %v1587_v27 = vpack.c.bf16 %v145_v26, %v143_v25  ;;  %v28_v33 = vld [vmem:[%s1783_s2] sm:$0x3]  ;;  %s1464_s2 = smov 64   ;;  %v25_v54 = vld [vmem:[%s1781_s0 + $0x8] sm:$0xff]  ;;  %vm1016_vm3 = vcmask 1041408   ;;  %vm1018_vm4 = vcmask 1043456  }
   0x9   :  { %1217 = vmatpush1.bf16.msra.mxu1 %v1543_v14  ;;  %1231 = vmatprep.subr.bf16.mxu0 %v1527_v9  ;;  %v31_v29 = vshrl.u32 %v30_v28, 7  ;;  %vm1020_vm5 = vcmask 1045504   ;;  %s1132_s29 = sshll.u32 %s1465_s28, 4  ;;  %s1133_s29 = int_to_ptr.vmem [resolvable:$true] %s1132_s29 }
   0xa   :  { %1219 = vmatprep.subr.bf16.mxu1 %v1552_v17  ;;  %s1439_s30 = scalar_lea.vmem %s1133_s29, 256  ;;  %p1444_p1 = scmp.lt.s32.totalorder %s1133_s29, %s1133_s29 }
   0xb   :  { %v32_v31 = vsub.s32 0, %v31_v29  ;;  %v36_v34 = vsub.s32 1, %v31_v29  ;;  %1146 = vmatmul.mubr.msk.f32.gmra.mrb[2].mxu0 %vm40_vm1, %v25_v54  ;;  %p1440_p0 = scmp.ne.s32.totalorder %s1133_s29, %s1439_s30  ;;  %p1445_p2 = scmp.lt.s32.totalorder %s1439_s30, %s1439_s30 }
   0xc   :  { %1233 = vmatpush1.bf16.msra.mxu0 %v1543_v14  ;;  %316 = vmatprep.mubr.f32.mxu0 %v1463_v7 }
   0xd   :  { %1221 = vmatpush1.bf16.msra.mxu1 %v1572_v23  ;;  %1235 = vmatprep.subr.bf16.mxu0 %v1552_v17  ;;  %v1611_v35 = vrot.slane %v28_v33, %v32_v31  ;;  %v1613_v36 = vrot.slane %v28_v33, %v36_v34  ;;  %p1446_p3 = por %p1445_p2, %p1444_p1 }
   0xe   :  { %1223 = vmatprep.subr.bf16.mxu1 %v1576_v24 }
   0xf   :  { %p1447_p4 = pnand %p1446_p3, %p1440_p0 }
  0x10   :  { %1237 = vmatpush1.bf16.msra.mxu0 %v1572_v23 }
  0x11   :  { %1225 = vmatpush1.bf16.msra.mxu1 %v1587_v27  ;;  %1239 = vmatprep.subr.bf16.mxu0 %v1576_v24 }
  0x12   :  { %1243 = vmatprep.subr.bf16.mxu1 %v1512_v3 }
  0x14   :  { %216 = vmatmul.mubr.f32.vlgmr.msra.gmra.mrb[0].mxu1 %v1463_v7  ;;  %1241 = vmatpush1.bf16.msra.mxu0 %v1587_v27 }
  0x15   :  { %1245 = vmatpush1.bf16.msra.mxu1 %v1525_v8  ;;  %427 = vmatprep.mubr.f32.mxu1 %v1463_v7 }
  0x16   :  { %1247 = vmatprep.subr.bf16.mxu1 %v1527_v9  ;;  %1259 = vmatprep.subr.bf16.mxu0 %v1512_v3 }
  0x19   :  { %1249 = vmatpush1.bf16.msra.mxu1 %v1543_v14 }
  0x1a   :  { %1251 = vmatprep.subr.bf16.mxu1 %v1552_v17 }
  0x1d   :  { %1253 = vmatpush1.bf16.msra.mxu1 %v1572_v23 }
  0x1e   :  { %1255 = vmatprep.subr.bf16.mxu1 %v1576_v24 }
  0x21   :  { %1257 = vmatpush1.bf16.msra.mxu1 %v1587_v27 }
  0x22   :  { %1275 = vmatprep.subr.bf16.mxu1 %v1512_v3 }
  0xda   :  { %v120_v30 = vpop.f32.mrb[0].mxu0 }
  0xdb   :  { %v122_v32 = vpop.f32.mrb[1].mxu0  ;;  %v1616_v37 = vadd.f32 %v120_v30, %v1611_v35 }
  0xdc   :  { %v1619_v38 = vadd.f32 %v122_v32, %v1613_v36 }
  0xde   :  { %v1633_v60 = vpop.f32.mrb[2].mxu0 }
  0xdf   :  { %v1635_v61 = vpop.f32.mrb[3].mxu0 }
  0xe7   :  { %v217_v39 = vpop.f32.mrb[0].mxu1 }
  0xe8   :  { %v222_v40 = vadd.f32 %v217_v39, %v1616_v37  ;;  %v219_v41 = vpop.f32.mrb[1].mxu1 }
  0xe9   :  { %v223_v42 = vadd.f32 %v219_v41, %v1619_v38 }
  0xea   :  { %v1147_v43 = vmul.f32 -1.442695, %v222_v40 }
  0xeb   :  { %v1148_v44 = vmul.f32 -1.442695, %v223_v42 }
  0xec   :  { %1359 = vpow2.f32 %v1147_v43 }
  0xed   :  { %1361 = vpow2.f32 %v1148_v44 }
  0xf6   :  { %v1360_v45 = vpop.eup %1359 }
  0xf7   :  { %v1362_v46 = vpop.eup %1361  ;;  %v230_v48 = vadd.f32 1.0, %v1360_v45 }
  0xf8   :  { %v231_v47 = vadd.f32 1.0, %v1362_v46 }
  0xfa   :  { %1363 = vrcp.f32 %v231_v47 }
  0xfb   :  { %1365 = vrcp.f32 %v230_v48 }
 0x104   :  { %v1364_v49 = vpop.eup %1363 }
 0x105   :  { %v236_v50 = vmul.f32 2.0, %v1364_v49  ;;  %v1366_v52 = vpop.eup %1365 }
 0x106   :  { %v238_v55 = vmul.f32 0.0, %v1366_v52 }
 0x107   :  { %v1149_v51 = vadd.f32 -1.0, %v236_v50 }
 0x109   :  { %v239_v53 = vmul.f32 %v1366_v52, %v1149_v51 }
 0x10b   :  { %241 = vrot.lane.b32.xlu0 %v239_v53, %s1464_s2 }
 0x17d   :  { %v242_v56 = vpop.permute.xlu0 %241 }
 0x17e   :  { %v244_v57 = vadd.f32 %v242_v56, %v238_v55 }
 0x180   :  { %1367 = vtanh.f32 %v244_v57  ;;  %v346_v16 = vrot.slane %v244_v57, 6 }
 0x18a   :  { %v1368_v58 = vpop.eup %1367 }
 0x18b   :  { %v1629_v59 = vmul.f32 %v1368_v58, %v1364_v49 }
 0x18d   :  { %248 = vrot.lane.b32.xlu0 %v1629_v59, %s1464_s2 }
 0x1ff   :  { %v249_v62 = vpop.permute.xlu0 %248 }
 0x200   :  { %1150 = vmatmul.mubr.msk.f32.vlgmr.msra.gmra.mrb[4].mxu0 %vm147_vm2, %v249_v62 }
 0x201   :  { %1261 = vmatpush1.bf16.msra.mxu0 %v1525_v8  ;;  %538 = vmatprep.mubr.f32.mxu0 %v1463_v7 }
 0x202   :  { %1263 = vmatprep.subr.bf16.mxu0 %v1527_v9 }
 0x205   :  { %1265 = vmatpush1.bf16.msra.mxu0 %v1543_v14 }
 0x206   :  { %1267 = vmatprep.subr.bf16.mxu0 %v1552_v17 }
 0x209   :  { %1269 = vmatpush1.bf16.msra.mxu0 %v1572_v23 }
 0x20a   :  { %1271 = vmatprep.subr.bf16.mxu0 %v1576_v24 }
 0x20d   :  { %1273 = vmatpush1.bf16.msra.mxu0 %v1587_v27 }
 0x20e   :  { %1291 = vmatprep.subr.bf16.mxu0 %v1512_v3 }
 0x2d3   :  { %v318_v63 = vpop.f32.mrb[4].mxu0 }
 0x2d4   :  { %v325_v0 = vrot.slane %v318_v63, 6  ;;  %v320_v1 = vpop.f32.mrb[5].mxu0 }
 0x2d5   :  { %v326_v2 = vrot.slane %v320_v1, 6 }
 0x2d6   :  { %v329_v4 = vadd.f32 %v325_v0, %v1616_v37 }
 0x2d7   :  { %v330_v5 = vadd.f32 %v326_v2, %v1619_v38 }
 0x2d8   :  { %v1151_v6 = vmul.f32 -1.442695, %v329_v4 }
 0x2d9   :  { %v1152_v10 = vmul.f32 -1.442695, %v330_v5 }
 0x2da   :  { %1369 = vpow2.f32 %v1151_v6 }
 0x2db   :  { %1371 = vpow2.f32 %v1152_v10 }
 0x2e4   :  { %v1370_v11 = vpop.eup %1369 }
 0x2e5   :  { %v1372_v12 = vpop.eup %1371  ;;  %v337_v13 = vadd.f32 1.0, %v1370_v11 }
 0x2e6   :  { %v338_v15 = vadd.f32 1.0, %v1372_v12 }
 0x2e7   :  { %1373 = vrcp.f32 %v337_v13 }
 0x2e8   :  { %1375 = vrcp.f32 %v338_v15 }
 0x2f1   :  { %v1374_v18 = vpop.eup %1373 }
 0x2f2   :  { %v1376_v19 = vpop.eup %1375  ;;  %v348_v20 = vmul.f32 %v1374_v18, %v346_v16 }
 0x2f3   :  { %v343_v21 = vmul.f32 2.0, %v1376_v19 }
 0x2f5   :  { %v1153_v22 = vadd.f32 -1.0, %v343_v21 }
 0x2f7   :  { %v349_v25 = vmul.f32 %v1374_v18, %v1153_v22 }
 0x2f9   :  { %351 = vrot.lane.b32.xlu1 %v349_v25, %s1464_s2 }
 0x36b   :  { %v352_v26 = vpop.permute.xlu1 %351 }
 0x36c   :  { %v354_v28 = vadd.f32 %v352_v26, %v348_v20 }
 0x36e   :  { %1377 = vtanh.f32 %v354_v28  ;;  %v457_v49 = vrot.slane %v354_v28, 6 }
 0x378   :  { %v1378_v29 = vpop.eup %1377 }
 0x379   :  { %v356_v30 = vmul.f32 %v1378_v29, %v1376_v19 }
 0x37b   :  { %v358_v31 = vrot.slane %v356_v30, 2  ;;  %v1017_v63 = vsel %vm1016_vm3, %v1629_v59, %v356_v30 }
 0x37d   :  { %359 = vrot.lane.b32.xlu1 %v358_v31, %s1464_s2 }
 0x3ef   :  { %v360_v32 = vpop.permute.xlu1 %359 }
 0x3f0   :  { %1154 = vmatmul.mubr.msk.f32.vlgmr.msra.gmra.mrb[2].mxu1 %vm147_vm2, %v360_v32 }
 0x3f1   :  { %1277 = vmatpush1.bf16.msra.mxu1 %v1525_v8  ;;  %649 = vmatprep.mubr.f32.mxu1 %v1463_v7 }
 0x3f2   :  { %1279 = vmatprep.subr.bf16.mxu1 %v1527_v9 }
 0x3f5   :  { %1281 = vmatpush1.bf16.msra.mxu1 %v1543_v14 }
 0x3f6   :  { %1283 = vmatprep.subr.bf16.mxu1 %v1552_v17 }
 0x3f9   :  { %1285 = vmatpush1.bf16.msra.mxu1 %v1572_v23 }
 0x3fa   :  { %1287 = vmatprep.subr.bf16.mxu1 %v1576_v24 }
 0x3fd   :  { %1289 = vmatpush1.bf16.msra.mxu1 %v1587_v27 }
 0x3fe   :  { %1307 = vmatprep.subr.bf16.mxu1 %v1512_v3 }
 0x4c3   :  { %v429_v33 = vpop.f32.mrb[2].mxu1 }
 0x4c4   :  { %v436_v34 = vrot.slane %v429_v33, 4  ;;  %v431_v39 = vpop.f32.mrb[3].mxu1 }
 0x4c5   :  { %v437_v40 = vrot.slane %v431_v39, 4  ;;  %v1700_v39 = vadd.f32 %v1635_v61, %v1613_v36 }
 0x4c6   :  { %v440_v41 = vadd.f32 %v436_v34, %v1616_v37  ;;  %v1696_v34 = vadd.f32 %v1633_v60, %v1611_v35 }
 0x4c7   :  { %v441_v42 = vadd.f32 %v437_v40, %v1619_v38 }
 0x4c8   :  { %v1155_v43 = vmul.f32 -1.442695, %v440_v41 }
 0x4c9   :  { %v1156_v44 = vmul.f32 -1.442695, %v441_v42 }
 0x4ca   :  { %1379 = vpow2.f32 %v1155_v43 }
 0x4cb   :  { %1381 = vpow2.f32 %v1156_v44 }
 0x4d4   :  { %v1380_v45 = vpop.eup %1379 }
 0x4d5   :  { %v1382_v46 = vpop.eup %1381  ;;  %v448_v47 = vadd.f32 1.0, %v1380_v45 }
 0x4d6   :  { %v449_v48 = vadd.f32 1.0, %v1382_v46 }
 0x4d7   :  { %1383 = vrcp.f32 %v448_v47 }
 0x4d8   :  { %1385 = vrcp.f32 %v449_v48 }
 0x4e1   :  { %v1384_v50 = vpop.eup %1383 }
 0x4e2   :  { %v1386_v51 = vpop.eup %1385  ;;  %v459_v52 = vmul.f32 %v1384_v50, %v457_v49 }
 0x4e3   :  { %v454_v53 = vmul.f32 2.0, %v1386_v51 }
 0x4e5   :  { %v1157_v54 = vadd.f32 -1.0, %v454_v53 }
 0x4e7   :  { %v460_v55 = vmul.f32 %v1384_v50, %v1157_v54 }
 0x4e9   :  { %462 = vrot.lane.b32.xlu0 %v460_v55, %s1464_s2 }
 0x55b   :  { %v463_v56 = vpop.permute.xlu0 %462 }
 0x55c   :  { %v465_v57 = vadd.f32 %v463_v56, %v459_v52 }
 0x55e   :  { %1387 = vtanh.f32 %v465_v57  ;;  %v568_v20 = vrot.slane %v465_v57, 6 }
 0x568   :  { %v1388_v58 = vpop.eup %1387 }
 0x569   :  { %v467_v62 = vmul.f32 %v1388_v58, %v1386_v51 }
 0x56b   :  { %v469_v0 = vrot.slane %v467_v62, 4  ;;  %v1019_v1 = vsel %vm1018_vm4, %v1017_v63, %v467_v62 }
 0x56d   :  { %470 = vrot.lane.b32.xlu1 %v469_v0, %s1464_s2 }
 0x5df   :  { %v471_v2 = vpop.permute.xlu1 %470 }
 0x5e0   :  { %1158 = vmatmul.mubr.msk.f32.vlgmr.msra.gmra.mrb[6].mxu0 %vm147_vm2, %v471_v2 }
 0x5e1   :  { %1293 = vmatpush1.bf16.msra.mxu0 %v1525_v8  ;;  %753 = vmatprep.mubr.f32.mxu0 %v1463_v7 }
 0x5e2   :  { %1295 = vmatprep.subr.bf16.mxu0 %v1527_v9 }
 0x5e5   :  { %1297 = vmatpush1.bf16.msra.mxu0 %v1543_v14 }
 0x5e6   :  { %1299 = vmatprep.subr.bf16.mxu0 %v1552_v17 }
 0x5e9   :  { %1301 = vmatpush1.bf16.msra.mxu0 %v1572_v23 }
 0x5ea   :  { %1303 = vmatprep.subr.bf16.mxu0 %v1576_v24 }
 0x5ed   :  { %1305 = vmatpush1.bf16.msra.mxu0 %v1587_v27 }
 0x5ee   :  { %1323 = vmatprep.subr.bf16.mxu0 %v1512_v3 }
 0x6b3   :  { %v540_v59 = vpop.f32.mrb[6].mxu0 }
 0x6b4   :  { %v547_v4 = vrot.slane %v540_v59, 2  ;;  %v542_v5 = vpop.f32.mrb[7].mxu0 }
 0x6b5   :  { %v548_v6 = vrot.slane %v542_v5, 2 }
 0x6b6   :  { %v551_v10 = vadd.f32 %v547_v4, %v1616_v37 }
 0x6b7   :  { %v552_v11 = vadd.f32 %v548_v6, %v1619_v38 }
 0x6b8   :  { %v1159_v12 = vmul.f32 -1.442695, %v551_v10 }
 0x6b9   :  { %v1160_v13 = vmul.f32 -1.442695, %v552_v11 }
 0x6ba   :  { %1389 = vpow2.f32 %v1159_v12 }
 0x6bb   :  { %1391 = vpow2.f32 %v1160_v13 }
 0x6c4   :  { %v1390_v15 = vpop.eup %1389 }
 0x6c5   :  { %v1392_v16 = vpop.eup %1391  ;;  %v559_v18 = vadd.f32 1.0, %v1390_v15 }
 0x6c6   :  { %v560_v19 = vadd.f32 1.0, %v1392_v16 }
 0x6c7   :  { %1393 = vrcp.f32 %v559_v18 }
 0x6c8   :  { %1395 = vrcp.f32 %v560_v19 }
 0x6d1   :  { %v1394_v3 = vpop.eup %1393 }
 0x6d2   :  { %v1396_v21 = vpop.eup %1395  ;;  %v570_v22 = vmul.f32 %v1394_v3, %v568_v20 }
 0x6d3   :  { %v565_v25 = vmul.f32 2.0, %v1396_v21 }
 0x6d5   :  { %v1161_v26 = vadd.f32 -1.0, %v565_v25 }
 0x6d7   :  { %v571_v28 = vmul.f32 %v1394_v3, %v1161_v26 }
 0x6d9   :  { %573 = vrot.lane.b32.xlu0 %v571_v28, %s1464_s2 }
 0x74b   :  { %v574_v37 = vpop.permute.xlu0 %573 }
 0x74c   :  { %v576_v38 = vadd.f32 %v574_v37, %v570_v22 }
 0x74e   :  { %1397 = vtanh.f32 %v576_v38  ;;  %v673_v35 = vrot.slane %v576_v38, 6 }
 0x758   :  { %v1398_v29 = vpop.eup %1397 }
 0x759   :  { %v578_v30 = vmul.f32 %v1398_v29, %v1396_v21 }
 0x75b   :  { %v580_v31 = vrot.slane %v578_v30, 6  ;;  %v1682_v32 = vsel %vm1020_vm5, %v1019_v1, %v578_v30 }
 0x75d   :  { %581 = vrot.lane.b32.xlu1 %v580_v31, %s1464_s2 }
 0x7cf   :  { %v582_v33 = vpop.permute.xlu1 %581 }
 0x7d0   :  { %1162 = vmatmul.mubr.msk.f32.vlgmr.msra.gmra.mrb[4].mxu1 %vm147_vm2, %v582_v33 }
 0x7d1   :  { %1309 = vmatpush1.bf16.msra.mxu1 %v1525_v8  ;;  %864 = vmatprep.mubr.f32.mxu1 %v1463_v7 }
 0x7d2   :  { %1311 = vmatprep.subr.bf16.mxu1 %v1527_v9 }
 0x7d5   :  { %1313 = vmatpush1.bf16.msra.mxu1 %v1543_v14 }
 0x7d6   :  { %1315 = vmatprep.subr.bf16.mxu1 %v1552_v17 }
 0x7d9   :  { %1317 = vmatpush1.bf16.msra.mxu1 %v1572_v23 }
 0x7da   :  { %1319 = vmatprep.subr.bf16.mxu1 %v1576_v24 }
 0x7dd   :  { %1321 = vmatpush1.bf16.msra.mxu1 %v1587_v27 }
 0x8a3   :  { %v651_v40 = vpop.f32.mrb[4].mxu1 }
 0x8a4   :  { %v656_v41 = vadd.f32 %v651_v40, %v1696_v34  ;;  %v653_v42 = vpop.f32.mrb[5].mxu1 }
 0x8a5   :  { %v657_v43 = vadd.f32 %v653_v42, %v1700_v39 }
 0x8a6   :  { %v1163_v44 = vmul.f32 -1.442695, %v656_v41 }
 0x8a7   :  { %v1164_v45 = vmul.f32 -1.442695, %v657_v43 }
 0x8a8   :  { %1399 = vpow2.f32 %v1163_v44 }
 0x8a9   :  { %1401 = vpow2.f32 %v1164_v45 }
 0x8b2   :  { %v1400_v46 = vpop.eup %1399 }
 0x8b3   :  { %v1402_v47 = vpop.eup %1401  ;;  %v664_v48 = vadd.f32 1.0, %v1400_v46 }
 0x8b4   :  { %v665_v49 = vadd.f32 1.0, %v1402_v47 }
 0x8b5   :  { %1403 = vrcp.f32 %v664_v48 }
 0x8b6   :  { %1405 = vrcp.f32 %v665_v49 }
 0x8bf   :  { %v1404_v60 = vpop.eup %1403 }
 0x8c0   :  { %v1406_v36 = vpop.eup %1405  ;;  %v675_v61 = vmul.f32 %v1404_v60, %v673_v35 }
 0x8c1   :  { %v670_v50 = vmul.f32 2.0, %v1406_v36 }
 0x8c3   :  { %v1165_v51 = vadd.f32 -1.0, %v670_v50 }
 0x8c5   :  { %v676_v52 = vmul.f32 %v1404_v60, %v1165_v51 }
 0x8c7   :  { %678 = vrot.lane.b32.xlu0 %v676_v52, %s1464_s2 }
 0x939   :  { %v679_v53 = vpop.permute.xlu0 %678 }
 0x93a   :  { %v681_v54 = vadd.f32 %v679_v53, %v675_v61 }
 0x93c   :  { %1407 = vtanh.f32 %v681_v54 }
 0x946   :  { %v1408_v55 = vpop.eup %1407 }
 0x947   :  { %v1705_v56 = vmul.f32 %v1408_v55, %v1406_v36 }
 0x949   :  { %685 = vrot.lane.b32.xlu1 %v1705_v56, %s1464_s2 }
 0x9bb   :  { %v686_v57 = vpop.permute.xlu1 %685 }
 0x9bc   :  { %1166 = vmatmul.mubr.msk.f32.vlgmr.msra.gmra.mrb[8].mxu0 %vm147_vm2, %v686_v57 }
 0x9bd   :  { %1325 = vmatpush1.bf16.msra.mxu0 %v1525_v8  ;;  %975 = vmatprep.mubr.f32.mxu0 %v1463_v7 }
 0x9be   :  { %1327 = vmatprep.subr.bf16.mxu0 %v1527_v9 }
 0x9c1   :  { %1329 = vmatpush1.bf16.msra.mxu0 %v1543_v14 }
 0x9c2   :  { %1331 = vmatprep.subr.bf16.mxu0 %v1552_v17 }
 0x9c5   :  { %1333 = vmatpush1.bf16.msra.mxu0 %v1572_v23 }
 0x9c6   :  { %1335 = vmatprep.subr.bf16.mxu0 %v1576_v24  ;;  %v783_v24 = vrot.slane %v681_v54, 6 }
 0x9c9   :  { %1337 = vmatpush1.bf16.msra.mxu0 %v1587_v27 }
 0xa8f   :  { %v755_v58 = vpop.f32.mrb[8].mxu0 }
 0xa90   :  { %v762_v62 = vrot.slane %v755_v58, 6  ;;  %v757_v63 = vpop.f32.mrb[9].mxu0 }
 0xa91   :  { %v763_v0 = vrot.slane %v757_v63, 6 }
 0xa92   :  { %v766_v8 = vadd.f32 %v762_v62, %v1696_v34 }
 0xa93   :  { %v767_v7 = vadd.f32 %v763_v0, %v1700_v39 }
 0xa94   :  { %v1167_v1 = vmul.f32 -1.442695, %v766_v8 }
 0xa95   :  { %v1168_v9 = vmul.f32 -1.442695, %v767_v7 }
 0xa96   :  { %1409 = vpow2.f32 %v1167_v1 }
 0xa97   :  { %1411 = vpow2.f32 %v1168_v9 }
 0xaa0   :  { %v1410_v14 = vpop.eup %1409 }
 0xaa1   :  { %v1412_v17 = vpop.eup %1411  ;;  %v774_v2 = vadd.f32 1.0, %v1410_v14 }
 0xaa2   :  { %v775_v23 = vadd.f32 1.0, %v1412_v17 }
 0xaa3   :  { %1413 = vrcp.f32 %v774_v2  ;;  %v1027_v2 = vld [vmem:[%s1785_s4 + $0x10] sm:$0xff] }
 0xaa4   :  { %1415 = vrcp.f32 %v775_v23 }
 0xaad   :  { %v1414_v27 = vpop.eup %1413 }
 0xaae   :  { %v1416_v59 = vpop.eup %1415  ;;  %v785_v4 = vmul.f32 %v1414_v27, %v783_v24  ;;  %v1028_v24 = vld [vmem:[%s1785_s4 + $0x18] sm:$0xff] }
 0xaaf   :  { %v780_v5 = vmul.f32 2.0, %v1416_v59 }
 0xab1   :  { %v1169_v6 = vadd.f32 -1.0, %v780_v5 }
 0xab3   :  { %v786_v10 = vmul.f32 %v1414_v27, %v1169_v6  ;;  %v1342_v27 = vpack.c.bf16 %v1028_v24, %v1027_v2  ;;  %v1031_v6 = vld [vmem:[%s1785_s4 + $0x30] sm:$0xff] }
 0xab5   :  { %788 = vrot.lane.b32.xlu0 %v786_v10, %s1464_s2  ;;  %v1032_v10 = vld [vmem:[%s1785_s4 + $0x38] sm:$0xff] }
 0xb27   :  { %v789_v11 = vpop.permute.xlu0 %788 }
 0xb28   :  { %v791_v12 = vadd.f32 %v789_v11, %v785_v4  ;;  %v1030_v4 = vld [vmem:[%s1785_s4 + $0x28] sm:$0xff]  ;;  %v1350_v11 = vpack.c.bf16 %v1032_v10, %v1031_v6 }
 0xb2a   :  { %1417 = vtanh.f32 %v791_v12  ;;  %v894_v31 = vrot.slane %v791_v12, 6 }
 0xb34   :  { %v1418_v13 = vpop.eup %1417 }
 0xb35   :  { %v793_v15 = vmul.f32 %v1418_v13, %v1416_v59  ;;  %v1029_v59 = vld [vmem:[%s1785_s4 + $0x20] sm:$0xff] }
 0xb36   :  { %v1346_v5 = vpack.c.bf16 %v1030_v4, %v1029_v59 }
 0xb37   :  { %v795_v16 = vrot.slane %v793_v15, 2  ;;  %v1022_v49 = vsel %vm1016_vm3, %v1705_v56, %v793_v15 }
 0xb39   :  { %796 = vrot.lane.b32.xlu1 %v795_v16, %s1464_s2 }
 0xbab   :  { %v797_v18 = vpop.permute.xlu1 %796 }
 0xbac   :  { %1170 = vmatmul.mubr.msk.f32.vlgmr.msra.gmra.mrb[6].mxu1 %vm147_vm2, %v797_v18 }
 0xc7f   :  { %v866_v19 = vpop.f32.mrb[6].mxu1 }
 0xc80   :  { %v873_v20 = vrot.slane %v866_v19, 4  ;;  %v868_v3 = vpop.f32.mrb[7].mxu1 }
 0xc81   :  { %v874_v21 = vrot.slane %v868_v3, 4 }
 0xc82   :  { %v877_v22 = vadd.f32 %v873_v20, %v1696_v34  ;;  %v1178_v20 = vld [vmem:[%s1786_s5] ss:$0 sm:$0xff] }
 0xc83   :  { %v878_v25 = vadd.f32 %v874_v21, %v1700_v39 }
 0xc84   :  { %v1171_v26 = vmul.f32 -1.442695, %v877_v22 }
 0xc85   :  { %v1172_v28 = vmul.f32 -1.442695, %v878_v25 }
 0xc86   :  { %1419 = vpow2.f32 %v1171_v26 }
 0xc87   :  { %1421 = vpow2.f32 %v1172_v28 }
 0xc90   :  { %v1420_v37 = vpop.eup %1419 }
 0xc91   :  { %v1422_v38 = vpop.eup %1421  ;;  %v885_v29 = vadd.f32 1.0, %v1420_v37 }
 0xc92   :  { %v886_v30 = vadd.f32 1.0, %v1422_v38 }
 0xc93   :  { %1423 = vrcp.f32 %v885_v29 }
 0xc94   :  { %1425 = vrcp.f32 %v886_v30 }
 0xc9d   :  { %v1424_v33 = vpop.eup %1423 }
 0xc9e   :  { %v1426_v40 = vpop.eup %1425  ;;  %v896_v41 = vmul.f32 %v1424_v33, %v894_v31 }
 0xc9f   :  { %v891_v42 = vmul.f32 2.0, %v1426_v40 }
 0xca1   :  { %v1173_v43 = vadd.f32 -1.0, %v891_v42 }
 0xca3   :  { %v897_v44 = vmul.f32 %v1424_v33, %v1173_v43 }
 0xca5   :  { %899 = vrot.lane.b32.xlu0 %v897_v44, %s1464_s2 }
 0xd17   :  { %v900_v45 = vpop.permute.xlu0 %899 }
 0xd18   :  { %v902_v46 = vadd.f32 %v900_v45, %v896_v41 }
 0xd1a   :  { %1427 = vtanh.f32 %v902_v46  ;;  %v1005_v0 = vrot.slane %v902_v46, 6 }
 0xd24   :  { %v1428_v47 = vpop.eup %1427 }
 0xd25   :  { %v904_v48 = vmul.f32 %v1428_v47, %v1426_v40 }
 0xd27   :  { %v906_v35 = vrot.slane %v904_v48, 4  ;;  %v1023_v60 = vsel %vm1018_vm4, %v1022_v49, %v904_v48 }
 0xd29   :  { %907 = vrot.lane.b32.xlu1 %v906_v35, %s1464_s2 }
 0xd2d   :  { %1042 = vrot.lane.b32.xlu1 %v1682_v32, %s1464_s2 }
 0xd9b   :  { %v908_v36 = vpop.permute.xlu1 %907 }
 0xd9c   :  { %1174 = vmatmul.mubr.msk.f32.vlgmr.msra.gmra.mrb[10].mxu0 %vm147_vm2, %v908_v36 }
 0xd9f   :  { %v1043_v61 = vpop.permute.xlu1 %1042 }
 0xda0   :  { %1207 = vmatprep.mubr.msk.f32.mxu1 %vm147_vm2, %v1043_v61 }
 0xe6f   :  { %v977_v50 = vpop.f32.mrb[10].mxu0 }
 0xe70   :  { %v984_v51 = vrot.slane %v977_v50, 2  ;;  %v979_v52 = vpop.f32.mrb[11].mxu0 }
 0xe71   :  { %v985_v53 = vrot.slane %v979_v52, 2 }
 0xe72   :  { %v988_v54 = vadd.f32 %v984_v51, %v1696_v34  ;;  %v1025_v34 = vld [vmem:[%s1785_s4] sm:$0xff] }
 0xe73   :  { %v989_v55 = vadd.f32 %v985_v53, %v1700_v39  ;;  %v1026_v39 = vld [vmem:[%s1785_s4 + $0x8] sm:$0xff] }
 0xe74   :  { %v1175_v56 = vmul.f32 -1.442695, %v988_v54  ;;  %v1338_v23 = vpack.c.bf16 %v1026_v39, %v1025_v34 }
 0xe75   :  { %v1176_v57 = vmul.f32 -1.442695, %v989_v55 }
 0xe76   :  { %1429 = vpow2.f32 %v1175_v56  ;;  %1339 = vmatprep.subr.bf16.mxu1 %v1338_v23 }
 0xe77   :  { %1431 = vpow2.f32 %v1176_v57  ;;  %1341 = vmatpush3.bf16.msra.mxu1 %v1338_v23 }
 0xe78   :  { %1343 = vmatprep.subr.bf16.mxu1 %v1342_v27 }
 0xe7b   :  { %1345 = vmatpush3.bf16.msra.mxu1 %v1342_v27 }
 0xe7c   :  { %1347 = vmatprep.subr.bf16.mxu1 %v1346_v5 }
 0xe7f   :  { %1349 = vmatpush3.bf16.msra.mxu1 %v1346_v5 }
 0xe80   :  { %v1430_v58 = vpop.eup %1429  ;;  %1351 = vmatprep.subr.bf16.mxu1 %v1350_v11 }
 0xe81   :  { %v1432_v32 = vpop.eup %1431  ;;  %v996_v62 = vadd.f32 1.0, %v1430_v58 }
 0xe82   :  { %v997_v63 = vadd.f32 1.0, %v1432_v32 }
 0xe83   :  { %1433 = vrcp.f32 %v996_v62  ;;  %1353 = vmatpush3.bf16.msra.mxu1 %v1350_v11 }
 0xe84   :  { %1435 = vrcp.f32 %v997_v63 }
 0xe8d   :  { %v1434_v8 = vpop.eup %1433 }
 0xe8e   :  { %v1436_v7 = vpop.eup %1435  ;;  %v1007_v1 = vmul.f32 %v1434_v8, %v1005_v0 }
 0xe8f   :  { %v1002_v9 = vmul.f32 2.0, %v1436_v7 }
 0xe91   :  { %v1177_v14 = vadd.f32 -1.0, %v1002_v9 }
 0xe93   :  { %v1008_v17 = vmul.f32 %v1434_v8, %v1177_v14 }
 0xe95   :  { %1010 = vrot.lane.b32.xlu0 %v1008_v17, %s1464_s2 }
 0xf07   :  { %v1011_v12 = vpop.permute.xlu0 %1010 }
 0xf08   :  { %v1013_v13 = vadd.f32 %v1011_v12, %v1007_v1 }
 0xf0a   :  { %1437 = vtanh.f32 %v1013_v13 }
 0xf14   :  { %v1438_v15 = vpop.eup %1437 }
 0xf15   :  { %v1015_v16 = vmul.f32 %v1438_v15, %v1436_v7 }
 0xf17   :  { %v1024_v18 = vsel %vm1020_vm5, %v1023_v60, %v1015_v16 }
 0xf18   :  { %1044 = vrot.lane.b32.xlu0 %v1024_v18, %s1464_s2 }
 0xf8a   :  { %v1045_v19 = vpop.permute.xlu0 %1044 }
 0xf8b   :  { %1208 = vmatmul.mubr.msk.f32.vlgmr.msra.gmra.mrb[8].mxu1 %vm147_vm2, %v1045_v19 }
0x105e   :  { %v1209_v3 = vpop.f32.mrb[8].mxu1 }
0x105f   :  { %v1122_v21 = vadd.f32 %v1209_v3, %v1178_v20  ;;  %v1116_v22 = vpop.f32.mrb[9].mxu1 }
0x1060   :  { %v1117_v25 = vadd.f32 %v1178_v20, %v1116_v22 }
0x1061   :  { %1126 = vst.msk [vmem:[#allocation2 + $0x8] sm:$0xff] %vm147_vm2, %v1122_v21 }
0x1062   :  { %1125 = vst.msk [vmem:[#allocation2] sm:$0xff] %vm147_vm2, %v1117_v25 }
0x1063   :  { %1450 = shalt.err (!%p1447_p4)
}
0x1064   :  { %s1451_s8 = scalar_lea.hbm %s1787_s6, 256 }
0x1065   :  { %p1452_p5 = scmp.ne.s32.totalorder %s1787_s6, %s1451_s8  ;;  %p1455_p6 = scmp.lt.u32.totalorder %s1451_s8, %s1787_s6 }
0x1067   :  { %p1457_p7 = pnand %p1455_p6, %p1452_p5 }
0x1069   :  { %1460 = shalt.err (!%p1457_p7)
}
0x106a   :  { %s1466_s11 = smov 128   ;;  %s1467_s12 = smov 8  }
0x106b   :  { %1138 = dma.vmem_to_hbm [thread:$0]  %s1133_s29, 256, %s1787_s6, [#allocation3], %s1466_s11, %s1466_s11, %s1467_s12  }
0x106c   :  { %1461 = dma.done.wait [#allocation3], 256  }
0x106d   :  { %1462 = vsyncadd [#allocation3], 4294967040 }
0x106e   :  { %1142 = vsyncpa [#allocation3], 1 }

</bundles_post_ra>
